<compile_context>
chip_gen: v5e
topology: v5e:2x2
jax: 0.10.0
libtpu: 0.0.40
codegen_flags: <defaults>
</compile_context>

<pallas_src>
import functools

import jax
import jax.numpy as jnp
from jax.experimental import pallas as pl
from jax.experimental.pallas import tpu as pltpu


def _block_kernel(x_ref, m_ref, w1_ref, b1_ref, w2_ref, b2_ref, a_ref,
                  out_ref, stk_ref, *, H, W, nb):
    """Fused two-stage PreBasicBlock on (C, H*W) lane-dense slabs.

    x_ref:   (nb, C, HW)         input images (channels on sublanes, HW on lanes)
    m_ref:   (9, HW)   f32       per-tap in-bounds masks (row 4 == all ones)
    w*_ref:  (C, 9*C)  f32       BN-scale-folded conv weights, tap-major columns
    b*_ref:  (C, HW)   f32       precomputed BN-shift "bias image" per stage
    a_ref:   (C, 2)    f32       PReLU slopes, column 0 = stage 1, column 1 = stage 2
    stk_ref: (9*C, HW) f32       VMEM scratch holding the 9 stacked tap slabs
    """
    HW = H * W

    # Loaded once per grid step, reused by both stages and all nb images.
    masks = m_ref[...]                       # (9, HW)
    w1 = w1_ref[...]                         # (C, 9C)
    w2 = w2_ref[...]
    bias1 = b1_ref[...]                      # (C, HW)
    bias2 = b2_ref[...]
    a = a_ref[...]                           # (C, 2)
    a1 = a[:, 0:1]
    a2 = a[:, 1:2]

    def stage(xin, w, bias, alpha):
        """PReLU(conv3x3(BN(x)) )  with BN folded into w / bias."""
        cin = xin.shape[0]
        # Stack the 9 shifted+masked taps along sublanes: row t*Cin+i holds
        # BN-scaled-x[i, p + off_t] (zero outside the image).
        for kh in range(3):
            for kw in range(3):
                t = kh * 3 + kw
                off = (kh - 1) * W + (kw - 1)
                if off == 0:
                    stk_ref[t * cin:(t + 1) * cin, :] = xin
                else:
                    xs = pltpu.roll(xin, (-off) % HW, axis=1)
                    stk_ref[t * cin:(t + 1) * cin, :] = xs * masks[t:t + 1, :]
        # Single MXU matmul per stage: (Cout, 9*Cin) x (9*Cin, HW).
        y = jnp.dot(w, stk_ref[...], preferred_element_type=jnp.float32) + bias
        return jnp.where(y > 0, y, y * alpha)

    for b in range(nb):
        x = x_ref[b].astype(jnp.float32)                     # (C, HW)
        out1 = stage(x, w1, bias1, a1) + x                   # residual 1
        out2 = stage(out1, w2, bias2, a2) + out1             # residual 2
        out_ref[b] = out2.astype(out_ref.dtype)


def pre_basic_block(x_nchw, params, eps=1e-4, batch_block=1):
    """Forward pass of PreBasicBlock (stride=1, downsample=None, inference BN)."""
    N, C, H, W = x_nchw.shape
    HW = H * W
    assert N % batch_block == 0
    nb = batch_block

    x = x_nchw.reshape(N, C, HW)             # free reshape, no transpose

    # ---- per-tap in-bounds masks (9, HW), batch-independent -----------------
    hh = jnp.arange(H)
    ww = jnp.arange(W)
    mask_rows = []
    for kh in range(3):
        for kw in range(3):
            dh, dw = kh - 1, kw - 1
            mh = (hh + dh >= 0) & (hh + dh < H)
            mw = (ww + dw >= 0) & (ww + dw < W)
            mask_rows.append((mh[:, None] & mw[None, :]).reshape(HW))
    masks = jnp.stack(mask_rows).astype(jnp.float32)          # (9, HW)

    # ---- fold BN (inference) into conv weight + bias image ------------------
    def fold(conv_w, gamma, beta, mean, var):
        scale = gamma / jnp.sqrt(var + eps)                    # (Cin,)
        shift = beta - mean * scale                            # (Cin,)
        # scale folds into the input-channel axis of the weight
        w_scaled = conv_w * scale[None, :, None, None]         # (O, I, 3, 3)
        # lane-dense 2-D layout: column index = t*Cin + i,  t = kh*3 + kw
        w2d = jnp.transpose(w_scaled, (0, 2, 3, 1)).reshape(C, 9 * C)
        # edge-mask-aware shift contribution (exact match of zero-padded BN output)
        b_tap = jnp.einsum("oikl,i->okl", conv_w, shift).reshape(C, 9)
        bias_img = b_tap @ masks                               # (O, HW)
        return w2d.astype(jnp.float32), bias_img.astype(jnp.float32)

    w1, bias1 = fold(params["conv1_w"], params["bn1_gamma"], params["bn1_beta"],
                     params["bn1_mean"], params["bn1_var"])
    w2, bias2 = fold(params["conv2_w"], params["bn2_gamma"], params["bn2_beta"],
                     params["bn2_mean"], params["bn2_var"])

    # PReLU slopes for both stages packed into one small input.
    alphas = jnp.stack([params["prelu1"], params["prelu2"]], axis=1).astype(jnp.float32)

    kernel = functools.partial(_block_kernel, H=H, W=W, nb=nb)

    img_spec = pl.BlockSpec((nb, C, HW), lambda n: (n, 0, 0))
    mask_spec = pl.BlockSpec((9, HW), lambda n: (0, 0))
    w_spec = pl.BlockSpec((C, 9 * C), lambda n: (0, 0))
    bias_spec = pl.BlockSpec((C, HW), lambda n: (0, 0))
    alpha_spec = pl.BlockSpec((C, 2), lambda n: (0, 0))

    out = pl.pallas_call(
        kernel,
        out_shape=jax.ShapeDtypeStruct((N, C, HW), x.dtype),
        grid=(N // nb,),
        in_specs=[
            img_spec,                 # x
            mask_spec,                # border masks (resident; constant index_map)
            w_spec, bias_spec,        # stage-1 folded weight + bias image
            w_spec, bias_spec,        # stage-2 folded weight + bias image
            alpha_spec,               # PReLU slopes (both stages)
        ],
        out_specs=img_spec,
        scratch_shapes=[pltpu.VMEM((9 * C, HW), jnp.float32)],
        compiler_params=pltpu.CompilerParams(
            dimension_semantics=("parallel",),
            vmem_limit_bytes=32 * 1024 * 1024),
    )(x, masks, w1, bias1, w2, bias2, alphas)

    return out.reshape(N, C, H, W)


# ---------------- pure-JAX reference (correctness sanity check) -------------
def _reference(x_nchw, params, eps=1e-4):
    def bn(x, g, b, m, v):
        return (x - m[None, :, None, None]) / jnp.sqrt(v + eps)[None, :, None, None] \
               * g[None, :, None, None] + b[None, :, None, None]

    def conv(x, w):
        return jax.lax.conv_general_dilated(
            x, w, window_strides=(1, 1), padding=((1, 1), (1, 1)),
            dimension_numbers=("NCHW", "OIHW", "NCHW"))

    def prelu(x, a):
        a = a[None, :, None, None]
        return jnp.where(x > 0, x, x * a)

    o1 = prelu(conv(bn(x_nchw, params["bn1_gamma"], params["bn1_beta"],
                       params["bn1_mean"], params["bn1_var"]),
                    params["conv1_w"]), params["prelu1"]) + x_nchw
    o2 = prelu(conv(bn(o1, params["bn2_gamma"], params["bn2_beta"],
                       params["bn2_mean"], params["bn2_var"]),
                    params["conv2_w"]), params["prelu2"]) + o1
    return o2


if __name__ == "__main__":
    # downsample=None requires inplanes == planes, stride == 1
    N, C, H, W = 2, 4, 16, 16
    key = jax.random.PRNGKey(0)
    ks = jax.random.split(key, 13)

    params = {
        "bn1_gamma": jax.random.uniform(ks[0], (C,), jnp.float32, 0.5, 1.5),
        "bn1_beta":  jax.random.normal(ks[1], (C,), jnp.float32) * 0.1,
        "bn1_mean":  jax.random.normal(ks[2], (C,), jnp.float32) * 0.1,
        "bn1_var":   jax.random.uniform(ks[3], (C,), jnp.float32, 0.5, 1.5),
        "bn2_gamma": jax.random.uniform(ks[4], (C,), jnp.float32, 0.5, 1.5),
        "bn2_beta":  jax.random.normal(ks[5], (C,), jnp.float32) * 0.1,
        "bn2_mean":  jax.random.normal(ks[6], (C,), jnp.float32) * 0.1,
        "bn2_var":   jax.random.uniform(ks[7], (C,), jnp.float32, 0.5, 1.5),
        # conv weights in PyTorch OIHW layout: (out, in, 3, 3), bias=False
        "conv1_w":   jax.random.normal(ks[8], (C, C, 3, 3), jnp.float32) * 0.1,
        "conv2_w":   jax.random.normal(ks[9], (C, C, 3, 3), jnp.float32) * 0.1,
        # PReLU per-channel slopes
        "prelu1":    jax.random.uniform(ks[10], (C,), jnp.float32, 0.05, 0.45),
        "prelu2":    jax.random.uniform(ks[11], (C,), jnp.float32, 0.05, 0.45),
    }

    x = jax.random.normal(ks[12], (N, C, H, W), jnp.float32)

    out = jax.block_until_ready(pre_basic_block(x, params))

    ref = _reference(x, params)
    assert out.shape == (N, C, H, W)
    assert jnp.allclose(out, ref, atol=1e-3, rtol=1e-3), "mismatch vs reference"

    print("KERNEL_OK")
</pallas_src>

<mosaic_0001>
module attributes {stable_mosaic.version = 11 : i64} {
  func.func @_block_kernel(%arg0: i32, %arg1: memref<1x4x256xf32, #tpu.memory_space<vmem>>, %arg2: memref<9x256xf32, #tpu.memory_space<vmem>>, %arg3: memref<4x36xf32, #tpu.memory_space<vmem>>, %arg4: memref<4x256xf32, #tpu.memory_space<vmem>>, %arg5: memref<4x36xf32, #tpu.memory_space<vmem>>, %arg6: memref<4x256xf32, #tpu.memory_space<vmem>>, %arg7: memref<4x2xf32, #tpu.memory_space<vmem>>, %arg8: memref<1x4x256xf32, #tpu.memory_space<vmem>>, %arg9: memref<36x256xf32, #tpu.memory_space<vmem>>) attributes {dimension_semantics = [#tpu.dimension_semantics<parallel>], iteration_bounds = array<i64: 2>, scalar_prefetch = 0 : i64, scratch_operands = 1 : i64, tpu.core_type = #tpu.core_type<tc>, window_params = [{transform_indices = @transform_0, window_bounds = array<i64: 1, 4, 256>}, {pipeline_mode = #tpu.pipeline_mode<synchronous>, transform_indices = @transform_1, window_bounds = array<i64: 9, 256>}, {pipeline_mode = #tpu.pipeline_mode<synchronous>, transform_indices = @transform_2, window_bounds = array<i64: 4, 36>}, {pipeline_mode = #tpu.pipeline_mode<synchronous>, transform_indices = @transform_3, window_bounds = array<i64: 4, 256>}, {pipeline_mode = #tpu.pipeline_mode<synchronous>, transform_indices = @transform_4, window_bounds = array<i64: 4, 36>}, {pipeline_mode = #tpu.pipeline_mode<synchronous>, transform_indices = @transform_5, window_bounds = array<i64: 4, 256>}, {pipeline_mode = #tpu.pipeline_mode<synchronous>, transform_indices = @transform_6, window_bounds = array<i64: 4, 2>}, {transform_indices = @transform_7, window_bounds = array<i64: 1, 4, 256>}]} {
    %c0 = arith.constant 0 : index
    %c0_0 = arith.constant 0 : index
    %0 = vector.load %arg2[%c0, %c0_0] : memref<9x256xf32, #tpu.memory_space<vmem>>, vector<9x256xf32>
    %c0_1 = arith.constant 0 : index
    %c0_2 = arith.constant 0 : index
    %1 = vector.load %arg3[%c0_1, %c0_2] : memref<4x36xf32, #tpu.memory_space<vmem>>, vector<4x36xf32>
    %c0_3 = arith.constant 0 : index
    %c0_4 = arith.constant 0 : index
    %2 = vector.load %arg5[%c0_3, %c0_4] : memref<4x36xf32, #tpu.memory_space<vmem>>, vector<4x36xf32>
    %c0_5 = arith.constant 0 : index
    %c0_6 = arith.constant 0 : index
    %3 = vector.load %arg4[%c0_5, %c0_6] : memref<4x256xf32, #tpu.memory_space<vmem>>, vector<4x256xf32>
    %c0_7 = arith.constant 0 : index
    %c0_8 = arith.constant 0 : index
    %4 = vector.load %arg6[%c0_7, %c0_8] : memref<4x256xf32, #tpu.memory_space<vmem>>, vector<4x256xf32>
    %c0_9 = arith.constant 0 : index
    %c0_10 = arith.constant 0 : index
    %5 = vector.load %arg7[%c0_9, %c0_10] : memref<4x2xf32, #tpu.memory_space<vmem>>, vector<4x2xf32>
    %6 = vector.extract_strided_slice %5 {offsets = [0, 0], sizes = [4, 1], strides = [1, 1]} : vector<4x2xf32> to vector<4x1xf32>
    %7 = vector.extract_strided_slice %5 {offsets = [0, 1], sizes = [4, 1], strides = [1, 1]} : vector<4x2xf32> to vector<4x1xf32>
    %c0_11 = arith.constant 0 : index
    %c0_12 = arith.constant 0 : index
    %c0_13 = arith.constant 0 : index
    %8 = vector.load %arg1[%c0_11, %c0_12, %c0_13] : memref<1x4x256xf32, #tpu.memory_space<vmem>>, vector<1x4x256xf32>
    %9 = vector.shape_cast %8 : vector<1x4x256xf32> to vector<4x256xf32>
    %c17_i32 = arith.constant 17 : i32
    %10 = tpu.dynamic_rotate %9 by %c17_i32 dim 1 : vector<4x256xf32>, i32 -> vector<4x256xf32>
    %11 = vector.extract_strided_slice %0 {offsets = [0, 0], sizes = [1, 256], strides = [1, 1]} : vector<9x256xf32> to vector<1x256xf32>
    %12 = vector.broadcast %11 : vector<1x256xf32> to vector<4x256xf32>
    %13 = arith.mulf %10, %12 : vector<4x256xf32>
    %c0_14 = arith.constant 0 : index
    %c0_15 = arith.constant 0 : index
    %14 = vector.load %arg9[%c0_14, %c0_15] : memref<36x256xf32, #tpu.memory_space<vmem>>, vector<4x256xf32>
    tpu.vector_store %arg9[%c0_14, %c0_15], %13 {strides = array<i32>} : memref<36x256xf32, #tpu.memory_space<vmem>>, vector<4x256xf32>,
    %c16_i32 = arith.constant 16 : i32
    %15 = tpu.dynamic_rotate %9 by %c16_i32 dim 1 : vector<4x256xf32>, i32 -> vector<4x256xf32>
    %16 = vector.extract_strided_slice %0 {offsets = [1, 0], sizes = [1, 256], strides = [1, 1]} : vector<9x256xf32> to vector<1x256xf32>
    %17 = vector.broadcast %16 : vector<1x256xf32> to vector<4x256xf32>
    %18 = arith.mulf %15, %17 : vector<4x256xf32>
    %c4 = arith.constant 4 : index
    %c0_16 = arith.constant 0 : index
    %19 = vector.load %arg9[%c4, %c0_16] : memref<36x256xf32, #tpu.memory_space<vmem>>, vector<4x256xf32>
    tpu.vector_store %arg9[%c4, %c0_16], %18 {strides = array<i32>} : memref<36x256xf32, #tpu.memory_space<vmem>>, vector<4x256xf32>,
    %c15_i32 = arith.constant 15 : i32
    %20 = tpu.dynamic_rotate %9 by %c15_i32 dim 1 : vector<4x256xf32>, i32 -> vector<4x256xf32>
    %21 = vector.extract_strided_slice %0 {offsets = [2, 0], sizes = [1, 256], strides = [1, 1]} : vector<9x256xf32> to vector<1x256xf32>
    %22 = vector.broadcast %21 : vector<1x256xf32> to vector<4x256xf32>
    %23 = arith.mulf %20, %22 : vector<4x256xf32>
    %c8 = arith.constant 8 : index
    %c0_17 = arith.constant 0 : index
    %24 = vector.load %arg9[%c8, %c0_17] : memref<36x256xf32, #tpu.memory_space<vmem>>, vector<4x256xf32>
    tpu.vector_store %arg9[%c8, %c0_17], %23 {strides = array<i32>} : memref<36x256xf32, #tpu.memory_space<vmem>>, vector<4x256xf32>,
    %c1_i32 = arith.constant 1 : i32
    %25 = tpu.dynamic_rotate %9 by %c1_i32 dim 1 : vector<4x256xf32>, i32 -> vector<4x256xf32>
    %26 = vector.extract_strided_slice %0 {offsets = [3, 0], sizes = [1, 256], strides = [1, 1]} : vector<9x256xf32> to vector<1x256xf32>
    %27 = vector.broadcast %26 : vector<1x256xf32> to vector<4x256xf32>
    %28 = arith.mulf %25, %27 : vector<4x256xf32>
    %c12 = arith.constant 12 : index
    %c0_18 = arith.constant 0 : index
    %29 = vector.load %arg9[%c12, %c0_18] : memref<36x256xf32, #tpu.memory_space<vmem>>, vector<4x256xf32>
    tpu.vector_store %arg9[%c12, %c0_18], %28 {strides = array<i32>} : memref<36x256xf32, #tpu.memory_space<vmem>>, vector<4x256xf32>,
    %c16 = arith.constant 16 : index
    %c0_19 = arith.constant 0 : index
    %30 = vector.load %arg9[%c16, %c0_19] : memref<36x256xf32, #tpu.memory_space<vmem>>, vector<4x256xf32>
    tpu.vector_store %arg9[%c16, %c0_19], %9 {strides = array<i32>} : memref<36x256xf32, #tpu.memory_space<vmem>>, vector<4x256xf32>,
    %c255_i32 = arith.constant 255 : i32
    %31 = tpu.dynamic_rotate %9 by %c255_i32 dim 1 : vector<4x256xf32>, i32 -> vector<4x256xf32>
    %32 = vector.extract_strided_slice %0 {offsets = [5, 0], sizes = [1, 256], strides = [1, 1]} : vector<9x256xf32> to vector<1x256xf32>
    %33 = vector.broadcast %32 : vector<1x256xf32> to vector<4x256xf32>
    %34 = arith.mulf %31, %33 : vector<4x256xf32>
    %c20 = arith.constant 20 : index
    %c0_20 = arith.constant 0 : index
    %35 = vector.load %arg9[%c20, %c0_20] : memref<36x256xf32, #tpu.memory_space<vmem>>, vector<4x256xf32>
    tpu.vector_store %arg9[%c20, %c0_20], %34 {strides = array<i32>} : memref<36x256xf32, #tpu.memory_space<vmem>>, vector<4x256xf32>,
    %c241_i32 = arith.constant 241 : i32
    %36 = tpu.dynamic_rotate %9 by %c241_i32 dim 1 : vector<4x256xf32>, i32 -> vector<4x256xf32>
    %37 = vector.extract_strided_slice %0 {offsets = [6, 0], sizes = [1, 256], strides = [1, 1]} : vector<9x256xf32> to vector<1x256xf32>
    %38 = vector.broadcast %37 : vector<1x256xf32> to vector<4x256xf32>
    %39 = arith.mulf %36, %38 : vector<4x256xf32>
    %c24 = arith.constant 24 : index
    %c0_21 = arith.constant 0 : index
    %40 = vector.load %arg9[%c24, %c0_21] : memref<36x256xf32, #tpu.memory_space<vmem>>, vector<4x256xf32>
    tpu.vector_store %arg9[%c24, %c0_21], %39 {strides = array<i32>} : memref<36x256xf32, #tpu.memory_space<vmem>>, vector<4x256xf32>,
    %c240_i32 = arith.constant 240 : i32
    %41 = tpu.dynamic_rotate %9 by %c240_i32 dim 1 : vector<4x256xf32>, i32 -> vector<4x256xf32>
    %42 = vector.extract_strided_slice %0 {offsets = [7, 0], sizes = [1, 256], strides = [1, 1]} : vector<9x256xf32> to vector<1x256xf32>
    %43 = vector.broadcast %42 : vector<1x256xf32> to vector<4x256xf32>
    %44 = arith.mulf %41, %43 : vector<4x256xf32>
    %c28 = arith.constant 28 : index
    %c0_22 = arith.constant 0 : index
    %45 = vector.load %arg9[%c28, %c0_22] : memref<36x256xf32, #tpu.memory_space<vmem>>, vector<4x256xf32>
    tpu.vector_store %arg9[%c28, %c0_22], %44 {strides = array<i32>} : memref<36x256xf32, #tpu.memory_space<vmem>>, vector<4x256xf32>,
    %c239_i32 = arith.constant 239 : i32
    %46 = tpu.dynamic_rotate %9 by %c239_i32 dim 1 : vector<4x256xf32>, i32 -> vector<4x256xf32>
    %47 = vector.extract_strided_slice %0 {offsets = [8, 0], sizes = [1, 256], strides = [1, 1]} : vector<9x256xf32> to vector<1x256xf32>
    %48 = vector.broadcast %47 : vector<1x256xf32> to vector<4x256xf32>
    %49 = arith.mulf %46, %48 : vector<4x256xf32>
    %c32 = arith.constant 32 : index
    %c0_23 = arith.constant 0 : index
    %50 = vector.load %arg9[%c32, %c0_23] : memref<36x256xf32, #tpu.memory_space<vmem>>, vector<4x256xf32>
    tpu.vector_store %arg9[%c32, %c0_23], %49 {strides = array<i32>} : memref<36x256xf32, #tpu.memory_space<vmem>>, vector<4x256xf32>,
    %c0_24 = arith.constant 0 : index
    %c0_25 = arith.constant 0 : index
    %51 = vector.load %arg9[%c0_24, %c0_25] : memref<36x256xf32, #tpu.memory_space<vmem>>, vector<36x256xf32>
    %cst = arith.constant dense<0.000000e+00> : vector<4x256xf32>
    %52 = tpu.matmul %1, %51, %cst {dimension_numbers = #tpu.dot_dimension_numbers<[1], [0], [0], [1], [0, 0, 1, 1], [], []>} : vector<4x36xf32>, vector<36x256xf32>, vector<4x256xf32> -> vector<4x256xf32>
    %53 = arith.addf %52, %3 : vector<4x256xf32>
    %cst_26 = arith.constant 0.000000e+00 : f32
    %54 = vector.broadcast %cst_26 : f32 to vector<4x256xf32>
    %55 = arith.cmpf ogt, %53, %54 : vector<4x256xf32>
    %56 = vector.broadcast %6 : vector<4x1xf32> to vector<4x256xf32>
    %57 = arith.mulf %53, %56 : vector<4x256xf32>
    %58 = arith.select %55, %53, %57 : vector<4x256xi1>, vector<4x256xf32>
    %59 = arith.addf %58, %9 : vector<4x256xf32>
    %c17_i32_27 = arith.constant 17 : i32
    %60 = tpu.dynamic_rotate %59 by %c17_i32_27 dim 1 : vector<4x256xf32>, i32 -> vector<4x256xf32>
    %61 = vector.extract_strided_slice %0 {offsets = [0, 0], sizes = [1, 256], strides = [1, 1]} : vector<9x256xf32> to vector<1x256xf32>
    %62 = vector.broadcast %61 : vector<1x256xf32> to vector<4x256xf32>
    %63 = arith.mulf %60, %62 : vector<4x256xf32>
    %c0_28 = arith.constant 0 : index
    %c0_29 = arith.constant 0 : index
    %64 = vector.load %arg9[%c0_28, %c0_29] : memref<36x256xf32, #tpu.memory_space<vmem>>, vector<4x256xf32>
    tpu.vector_store %arg9[%c0_28, %c0_29], %63 {strides = array<i32>} : memref<36x256xf32, #tpu.memory_space<vmem>>, vector<4x256xf32>,
    %c16_i32_30 = arith.constant 16 : i32
    %65 = tpu.dynamic_rotate %59 by %c16_i32_30 dim 1 : vector<4x256xf32>, i32 -> vector<4x256xf32>
    %66 = vector.extract_strided_slice %0 {offsets = [1, 0], sizes = [1, 256], strides = [1, 1]} : vector<9x256xf32> to vector<1x256xf32>
    %67 = vector.broadcast %66 : vector<1x256xf32> to vector<4x256xf32>
    %68 = arith.mulf %65, %67 : vector<4x256xf32>
    %c4_31 = arith.constant 4 : index
    %c0_32 = arith.constant 0 : index
    %69 = vector.load %arg9[%c4_31, %c0_32] : memref<36x256xf32, #tpu.memory_space<vmem>>, vector<4x256xf32>
    tpu.vector_store %arg9[%c4_31, %c0_32], %68 {strides = array<i32>} : memref<36x256xf32, #tpu.memory_space<vmem>>, vector<4x256xf32>,
    %c15_i32_33 = arith.constant 15 : i32
    %70 = tpu.dynamic_rotate %59 by %c15_i32_33 dim 1 : vector<4x256xf32>, i32 -> vector<4x256xf32>
    %71 = vector.extract_strided_slice %0 {offsets = [2, 0], sizes = [1, 256], strides = [1, 1]} : vector<9x256xf32> to vector<1x256xf32>
    %72 = vector.broadcast %71 : vector<1x256xf32> to vector<4x256xf32>
    %73 = arith.mulf %70, %72 : vector<4x256xf32>
    %c8_34 = arith.constant 8 : index
    %c0_35 = arith.constant 0 : index
    %74 = vector.load %arg9[%c8_34, %c0_35] : memref<36x256xf32, #tpu.memory_space<vmem>>, vector<4x256xf32>
    tpu.vector_store %arg9[%c8_34, %c0_35], %73 {strides = array<i32>} : memref<36x256xf32, #tpu.memory_space<vmem>>, vector<4x256xf32>,
    %c1_i32_36 = arith.constant 1 : i32
    %75 = tpu.dynamic_rotate %59 by %c1_i32_36 dim 1 : vector<4x256xf32>, i32 -> vector<4x256xf32>
    %76 = vector.extract_strided_slice %0 {offsets = [3, 0], sizes = [1, 256], strides = [1, 1]} : vector<9x256xf32> to vector<1x256xf32>
    %77 = vector.broadcast %76 : vector<1x256xf32> to vector<4x256xf32>
    %78 = arith.mulf %75, %77 : vector<4x256xf32>
    %c12_37 = arith.constant 12 : index
    %c0_38 = arith.constant 0 : index
    %79 = vector.load %arg9[%c12_37, %c0_38] : memref<36x256xf32, #tpu.memory_space<vmem>>, vector<4x256xf32>
    tpu.vector_store %arg9[%c12_37, %c0_38], %78 {strides = array<i32>} : memref<36x256xf32, #tpu.memory_space<vmem>>, vector<4x256xf32>,
    %c16_39 = arith.constant 16 : index
    %c0_40 = arith.constant 0 : index
    %80 = vector.load %arg9[%c16_39, %c0_40] : memref<36x256xf32, #tpu.memory_space<vmem>>, vector<4x256xf32>
    tpu.vector_store %arg9[%c16_39, %c0_40], %59 {strides = array<i32>} : memref<36x256xf32, #tpu.memory_space<vmem>>, vector<4x256xf32>,
    %c255_i32_41 = arith.constant 255 : i32
    %81 = tpu.dynamic_rotate %59 by %c255_i32_41 dim 1 : vector<4x256xf32>, i32 -> vector<4x256xf32>
    %82 = vector.extract_strided_slice %0 {offsets = [5, 0], sizes = [1, 256], strides = [1, 1]} : vector<9x256xf32> to vector<1x256xf32>
    %83 = vector.broadcast %82 : vector<1x256xf32> to vector<4x256xf32>
    %84 = arith.mulf %81, %83 : vector<4x256xf32>
    %c20_42 = arith.constant 20 : index
    %c0_43 = arith.constant 0 : index
    %85 = vector.load %arg9[%c20_42, %c0_43] : memref<36x256xf32, #tpu.memory_space<vmem>>, vector<4x256xf32>
    tpu.vector_store %arg9[%c20_42, %c0_43], %84 {strides = array<i32>} : memref<36x256xf32, #tpu.memory_space<vmem>>, vector<4x256xf32>,
    %c241_i32_44 = arith.constant 241 : i32
    %86 = tpu.dynamic_rotate %59 by %c241_i32_44 dim 1 : vector<4x256xf32>, i32 -> vector<4x256xf32>
    %87 = vector.extract_strided_slice %0 {offsets = [6, 0], sizes = [1, 256], strides = [1, 1]} : vector<9x256xf32> to vector<1x256xf32>
    %88 = vector.broadcast %87 : vector<1x256xf32> to vector<4x256xf32>
    %89 = arith.mulf %86, %88 : vector<4x256xf32>
    %c24_45 = arith.constant 24 : index
    %c0_46 = arith.constant 0 : index
    %90 = vector.load %arg9[%c24_45, %c0_46] : memref<36x256xf32, #tpu.memory_space<vmem>>, vector<4x256xf32>
    tpu.vector_store %arg9[%c24_45, %c0_46], %89 {strides = array<i32>} : memref<36x256xf32, #tpu.memory_space<vmem>>, vector<4x256xf32>,
    %c240_i32_47 = arith.constant 240 : i32
    %91 = tpu.dynamic_rotate %59 by %c240_i32_47 dim 1 : vector<4x256xf32>, i32 -> vector<4x256xf32>
    %92 = vector.extract_strided_slice %0 {offsets = [7, 0], sizes = [1, 256], strides = [1, 1]} : vector<9x256xf32> to vector<1x256xf32>
    %93 = vector.broadcast %92 : vector<1x256xf32> to vector<4x256xf32>
    %94 = arith.mulf %91, %93 : vector<4x256xf32>
    %c28_48 = arith.constant 28 : index
    %c0_49 = arith.constant 0 : index
    %95 = vector.load %arg9[%c28_48, %c0_49] : memref<36x256xf32, #tpu.memory_space<vmem>>, vector<4x256xf32>
    tpu.vector_store %arg9[%c28_48, %c0_49], %94 {strides = array<i32>} : memref<36x256xf32, #tpu.memory_space<vmem>>, vector<4x256xf32>,
    %c239_i32_50 = arith.constant 239 : i32
    %96 = tpu.dynamic_rotate %59 by %c239_i32_50 dim 1 : vector<4x256xf32>, i32 -> vector<4x256xf32>
    %97 = vector.extract_strided_slice %0 {offsets = [8, 0], sizes = [1, 256], strides = [1, 1]} : vector<9x256xf32> to vector<1x256xf32>
    %98 = vector.broadcast %97 : vector<1x256xf32> to vector<4x256xf32>
    %99 = arith.mulf %96, %98 : vector<4x256xf32>
    %c32_51 = arith.constant 32 : index
    %c0_52 = arith.constant 0 : index
    %100 = vector.load %arg9[%c32_51, %c0_52] : memref<36x256xf32, #tpu.memory_space<vmem>>, vector<4x256xf32>
    tpu.vector_store %arg9[%c32_51, %c0_52], %99 {strides = array<i32>} : memref<36x256xf32, #tpu.memory_space<vmem>>, vector<4x256xf32>,
    %c0_53 = arith.constant 0 : index
    %c0_54 = arith.constant 0 : index
    %101 = vector.load %arg9[%c0_53, %c0_54] : memref<36x256xf32, #tpu.memory_space<vmem>>, vector<36x256xf32>
    %cst_55 = arith.constant dense<0.000000e+00> : vector<4x256xf32>
    %102 = tpu.matmul %2, %101, %cst_55 {dimension_numbers = #tpu.dot_dimension_numbers<[1], [0], [0], [1], [0, 0, 1, 1], [], []>} : vector<4x36xf32>, vector<36x256xf32>, vector<4x256xf32> -> vector<4x256xf32>
    %103 = arith.addf %102, %4 : vector<4x256xf32>
    %cst_56 = arith.constant 0.000000e+00 : f32
    %104 = vector.broadcast %cst_56 : f32 to vector<4x256xf32>
    %105 = arith.cmpf ogt, %103, %104 : vector<4x256xf32>
    %106 = vector.broadcast %7 : vector<4x1xf32> to vector<4x256xf32>
    %107 = arith.mulf %103, %106 : vector<4x256xf32>
    %108 = arith.select %105, %103, %107 : vector<4x256xi1>, vector<4x256xf32>
    %109 = arith.addf %108, %59 : vector<4x256xf32>
    %c0_57 = arith.constant 0 : index
    %c0_58 = arith.constant 0 : index
    %c0_59 = arith.constant 0 : index
    %110 = vector.load %arg8[%c0_57, %c0_58, %c0_59] : memref<1x4x256xf32, #tpu.memory_space<vmem>>, vector<1x4x256xf32>
    %111 = vector.shape_cast %110 : vector<1x4x256xf32> to vector<4x256xf32>
    %112 = vector.shape_cast %109 : vector<4x256xf32> to vector<1x4x256xf32>
    tpu.vector_store %arg8[%c0_57, %c0_58, %c0_59], %112 {strides = array<i32>} : memref<1x4x256xf32, #tpu.memory_space<vmem>>, vector<1x4x256xf32>,
    return
  }
  func.func @transform_0(%arg0: i32) -> (i32, i32, i32) {
    %c0_i32 = arith.constant 0 : i32
    %c0_i32_0 = arith.constant 0 : i32
    %c0_i32_1 = arith.constant 0 : i32
    return %arg0, %c0_i32, %c0_i32_0 : i32, i32, i32
  }
  func.func @transform_1(%arg0: i32) -> (i32, i32) {
    %c0_i32 = arith.constant 0 : i32
    %c0_i32_0 = arith.constant 0 : i32
    %c0_i32_1 = arith.constant 0 : i32
    return %c0_i32, %c0_i32_0 : i32, i32
  }
  func.func @transform_2(%arg0: i32) -> (i32, i32) {
    %c0_i32 = arith.constant 0 : i32
    %c0_i32_0 = arith.constant 0 : i32
    %c0_i32_1 = arith.constant 0 : i32
    return %c0_i32, %c0_i32_0 : i32, i32
  }
  func.func @transform_3(%arg0: i32) -> (i32, i32) {
    %c0_i32 = arith.constant 0 : i32
    %c0_i32_0 = arith.constant 0 : i32
    %c0_i32_1 = arith.constant 0 : i32
    return %c0_i32, %c0_i32_0 : i32, i32
  }
  func.func @transform_4(%arg0: i32) -> (i32, i32) {
    %c0_i32 = arith.constant 0 : i32
    %c0_i32_0 = arith.constant 0 : i32
    %c0_i32_1 = arith.constant 0 : i32
    return %c0_i32, %c0_i32_0 : i32, i32
  }
  func.func @transform_5(%arg0: i32) -> (i32, i32) {
    %c0_i32 = arith.constant 0 : i32
    %c0_i32_0 = arith.constant 0 : i32
    %c0_i32_1 = arith.constant 0 : i32
    return %c0_i32, %c0_i32_0 : i32, i32
  }
  func.func @transform_6(%arg0: i32) -> (i32, i32) {
    %c0_i32 = arith.constant 0 : i32
    %c0_i32_0 = arith.constant 0 : i32
    %c0_i32_1 = arith.constant 0 : i32
    return %c0_i32, %c0_i32_0 : i32, i32
  }
  func.func @transform_7(%arg0: i32) -> (i32, i32, i32) {
    %c0_i32 = arith.constant 0 : i32
    %c0_i32_0 = arith.constant 0 : i32
    %c0_i32_1 = arith.constant 0 : i32
    return %arg0, %c0_i32, %c0_i32_0 : i32, i32, i32
  }
}

</mosaic_0001>

<bundles_post_ra>
// kernel: tpu_custom_call.1
= control target key start
LH: loop header
LB: loop body
LE: loop exit
PB: predicated region body
PF: predicated region fallthrough
CT: control target
= control target key end

     0   :  { %s1779_s0 = inlined_call_operand.hbm [shape: f32[2,4,256], index: 0, kind: input, shape index: {}]   ;;  %s1780_s1 = inlined_call_operand.hbm [shape: f32[9,256], index: 1, kind: input, shape index: {}]   ;;  %s1781_s2 = inlined_call_operand.vmem [shape: f32[4,36], index: 2, kind: input, shape index: {}]   ;;  %s1782_s3 = inlined_call_operand.hbm [shape: f32[4,256], index: 3, kind: input, shape index: {}]   ;;  %s1783_s4 = inlined_call_operand.hbm [shape: f32[4,36], index: 4, kind: input, shape index: {}]   ;;  %s1784_s5 = inlined_call_operand.hbm [shape: f32[4,256], index: 5, kind: input, shape index: {}]   ;;  %s1785_s6 = inlined_call_operand.vmem [shape: f32[4,2], index: 6, kind: input, shape index: {}]   ;;  %s1786_s7 = inlined_call_operand.hbm [shape: f32[2,4,256], index: 7, kind: output, shape index: {}]  }
   0x1   :  { %1787 = sst [smem:[#allocation17_spill]] %s1780_s1 }
   0x2   :  { %1788 = sst [smem:[#allocation18_spill]] %s1782_s3 }
   0x3   :  { %12 = vsyncpa [#allocation4], 0 }
   0x4   :  { %14 = vsyncpa [#allocation4 + $0x1], 0 }
   0x5   :  { %15 = vsyncpa [#allocation7], 0 }
   0x6   :  { %16 = vsyncpa [#allocation10], 0 }
   0x7   :  { %17 = vsyncpa [#allocation5], 0 }
   0x8   :  { %19 = vsyncpa [#allocation5 + $0x1], 0  ;;  %s1361_s24 = smov 0   ;;  %s1363_s25 = smov 0  }
   0x9   :  { %s1365_s26 = smov 0   ;;  %s1367_s27 = smov 0  }
   0xa LB: > { %s1789_s1 = sld [smem:[#allocation17_spill]]  ;;  %s1385_s8 = sadd.s32 4294967295, %s1303_s27   ;;  %s1303_s27 = sphi %s1367_s27, %s1802_s27   ;;  %s1299_s26 = sphi %s1365_s26, %s1801_s26   ;;  %s1295_s25 = sphi %s1363_s25, %s1800_s25   ;;  %s1291_s24 = sphi %s1361_s24, %s1799_s24  }
   0xb   : > { %p945_p0 = scmp.ge.s32.totalorder %s1303_s27, 1  ;;  %p46_p1 = scmp.eq.s32.totalorder %s1385_s8, 0 }
   0xc   : > { %p208_p2 = scmp.lt.s32.totalorder %s1303_s27, 3  ;;  %s1305_s10 = smov [#allocation6]  }
   0xd   : > { %s221_s11 = sshll.u32 %s1305_s10, 4  ;;  %s249_s14 = sshll.u32 %s1783_s4, 4  ;;  %s222_s11 = int_to_ptr.vmem [resolvable:$true] %s221_s11  ;;  %s250_s14 = int_to_ptr.hbm [resolvable:$true] %s249_s14 }
   0xe   : > { %p1390_p3 = pnand %p945_p0, %p208_p2  ;;  %s1792_s3 = sld [smem:[#allocation18_spill]] }
   0xf   : > { %s1306_s19 = smov [#allocation9]   ;;  %s1307_s21 = smov 256  }
  0x10   : > { %s219_s30 = sshll.u32 %s1789_s1, 4  ;;  %p996_p4 = pneg %p1390_p3  ;;  %s220_s30 = int_to_ptr.hbm [resolvable:$true] %s219_s30 }
  0x11   : > { %s251_s20 = sshll.u32 %s1306_s19, 4  ;;  %s1308_s22 = smov 16   ;;  %s252_s20 = int_to_ptr.vmem [resolvable:$true] %s251_s20 }
  0x12   : > { %p1402_p6 = pnand %p996_p4, %p46_p1  ;;  %s261_s29 = sshll.u32 %s1784_s5, 4  ;;  %s262_s29 = int_to_ptr.hbm [resolvable:$true] %s261_s29 }
  0x13   : > { %s1309_s10 = smov [#allocation8]   ;;  %s944_s13 = sadd.s32 4294967294, %s1303_s27  }
  0x14   : > { %s237_s18 = sshll.u32 %s1792_s3, 4  ;;  %s239_s12 = sshll.u32 %s1309_s10, 4  ;;  %s238_s18 = int_to_ptr.hbm [resolvable:$true] %s237_s18  ;;  %s240_s12 = int_to_ptr.vmem [resolvable:$true] %s239_s12 }
  0x15   : > { %999 = dma.hbm_to_vmem [thread:$0]  (!%p1402_p6), %s220_s30, 512, %s222_s11, [#allocation7], %s1307_s21, %s1307_s21, %s1308_s22  }
  0x16   : > { %1005 = dma.hbm_to_vmem [thread:$0]  (!%p1402_p6), %s250_s14, 64, %s252_s20, [#allocation10]  }
  0x17   : > { %1002 = dma.hbm_to_vmem [thread:$0]  (!%p1402_p6), %s238_s18, 128, %s240_s12, [#allocation7]  }
  0x18   : > { %s1310_s30 = smov [#allocation11]   ;;  %s1422_s14 = sadd.s32 1, %s1303_s27  }
  0x19   : > { %s263_s11 = sshll.u32 %s1310_s30, 4  ;;  %s29_s16 = ssub.s32 %s1303_s27, %s1422_s14  ;;  %s264_s11 = int_to_ptr.vmem [resolvable:$true] %s263_s11 }
  0x1a   : > { %1008 = dma.hbm_to_vmem [thread:$0]  (!%p1402_p6), %s262_s29, 128, %s264_s11, [#allocation10]  }
  0x1b   : > { %s32_s17 = sadd.s32 1, %s1299_s26  ;;  %p30_p7 = scmp.eq.s32.totalorder %s29_s16, 0 }
  0x1c   : > { %p39_p8 = scmp.ne.s32.totalorder %s1299_s26, %s1295_s25  ;;  %p40_p9 = scmp.eq.s32.totalorder %s1303_s27, 0 }
  0x1d   : > { %p45_p10 = scmp.ne.s32.totalorder %s1295_s25, %s1291_s24  ;;  %p195_p13 = scmp.eq.s32.totalorder %s1385_s8, 1 }
  0x1e   : > { %s1433_s18 = scalar_select %p30_p7, %s1299_s26, %s32_s17  }
  0x1f   : > { %p1435_p11 = por %p40_p9, %p39_p8  ;;  %p1441_p12 = por %p46_p1, %p45_p10 }
  0x20   : > { %p201_p0 = scmp.eq.s32.totalorder %s944_s13, 1  ;;  %p1021_p2 = scmp.lt.s32.totalorder %s1303_s27, 2 }
  0x21   : > { %s277_s20 = sand.u32 1, %s1299_s26   ;;  %p1448_p4 = por %p195_p13, %p39_p8 }
  0x22   : > { %p1452_p6 = por %p201_p0, %p45_p10  ;;  %s951_s23 = sshll.u32 %s277_s20, 3 }
  0x23   : > { %s974_s28 = sshll.u32 %s1303_s27, 3  ;;  %s281_s30 = scalar_lea.vmem [#allocation3], %s951_s23 }
  0x24   : > { %s286_s12 = scalar_lea.hbm %s1779_s0, %s974_s28  ;;  %s290_s11 = sshll.u32 %s281_s30, 4  ;;  %s291_s11 = int_to_ptr.vmem [resolvable:$true] %s290_s11 }
  0x25   : > { %s288_s16 = sshll.u32 %s286_s12, 4  ;;  %p1462_p7 = pnand %p1021_p2, %p1435_p11  ;;  %s289_s16 = int_to_ptr.hbm [resolvable:$true] %s288_s16 }
  0x26   : > { %s278_s17 = scalar_lea.sflag [#allocation4], %s277_s20  ;;  %s1199_s1 = sshra.s32 %s289_s16, 4  ;;  %s1200_s1 = int_to_ptr.hbm [resolvable:$true] %s1199_s1 }
  0x27   : > { %s1201_s3 = scalar_lea.hbm %s1200_s1, 8  ;;  %p1203_p9 = pneg %p1462_p7 }
  0x28   : > { %p1202_p8 = scmp.ne.s32.totalorder %s1200_s1, %s1201_s3  ;;  %s1206_s29 = scalar_lea.hbm %s1779_s0, 16 }
  0x29   : > { %p1207_p11 = scmp.lt.s32.totalorder %s1200_s1, %s1779_s0  ;;  %p1208_p0 = scmp.lt.s32.totalorder %s1206_s29, %s1201_s3 }
  0x2a   : > { %p1204_p10 = pnand %p1203_p9, %p1202_p8 }
  0x2b   : > { %p1209_p2 = por %p1208_p0, %p1207_p11 }
  0x2c   : > { %p1205_p13 = pneg %p1204_p10 }
  0x2e   : > { %p1210_p5 = pnand %p1209_p2, %p1205_p13 }
  0x30   : > { %1213 = shalt.err (!%p1210_p5)
}
  0x31   : > { %1012 = dma.hbm_to_vmem [thread:$0]  (!%p1462_p7), %s289_s16, 128, %s291_s11, %s278_s17  }
  0x32   : > { %299 = sbr.rel (%p1390_p3) target bundleno = 719 (0x2cf), region = 48  ;;  %s1479_s20 = sand.u32 (!%p1390_p3), 1, %s1295_s25  }
  0x33   : > { %s955_s12 = sshll.u32 (!%p1390_p3), %s1479_s20, 3  ;;  %s302_s30 = scalar_lea.sflag (!%p1390_p3), [#allocation4], %s1479_s20 }
  0x34   : > { %s305_s1 = scalar_lea.vmem (!%p1390_p3), [#allocation3], %s955_s12 }
  0x37   : > { %1274 = dma.done.wait (%p1441_p12), %s302_s30, 128  }
  0x38   : > { %1276 = vsyncadd (%p1441_p12), %s302_s30, 4294967168 }
  0x39   : > { %1278 = dma.done.wait (%p46_p1), [#allocation7], 640  }
  0x3a   : > { %1280 = vsyncadd (%p46_p1), [#allocation7], 4294966656 }
  0x3b   : > { %1282 = dma.done.wait (%p46_p1), [#allocation10], 192  }
  0x3c   : > { %1284 = vsyncadd (%p46_p1), [#allocation10], 4294967104  ;;  %v1497_v0 = vld [vmem:[%s305_s1] sm:$0xff]  ;;  %s1311_s3 = smov 16   ;;  %s1312_s9 = smov 15   ;;  %v377_v20 = vlaneseq  ;;  %v1526_v22 = vld [vmem:[#allocation6] sm:$0xff] }
  0x3d   : > { %368 = vst [vmem:[#allocation1] ss:$2 sm:$0xff] %v1497_v0  ;;  %s1313_s15 = smov 1   ;;  %s1314_s11 = smov 127   ;;  %v1528_v23 = vld [vmem:[#allocation6 + $0x8] sm:$0xff]  ;;  %v400_v24 = vperm.slane %v1526_v22, 1 }
  0x3e   : > { %s1315_s16 = smov 113   ;;  %s1316_s13 = smov 112   ;;  %v1524_v21 = vand.u32 127, %v377_v20  ;;  %v401_v25 = vperm.slane %v1528_v23, 1  ;;  %v442_v36 = vperm.slane %v1526_v22, 3  ;;  %v443_v37 = vperm.slane %v1528_v23, 3 }
  0x3f   : > { %s1317_s17 = smov 17   ;;  %s1318_s23 = smov 111   ;;  %v473_v39 = vperm.slane %v1526_v22, 5  ;;  %v474_v40 = vperm.slane %v1528_v23, 5  ;;  %v497_v54 = vperm.slane %v1526_v22, 6  ;;  %v498_v55 = vperm.slane %v1528_v23, 6 }
  0x40   : > { %vm397_vm0 = vcmp.lt.s32.totalorder %v1524_v21, 16  ;;  %vm439_vm1 = vcmp.lt.s32.totalorder %v1524_v21, 1  ;;  %vm470_vm2 = vcmp.lt.s32.totalorder %v1524_v21, 127  ;;  %vm494_vm3 = vcmp.lt.s32.totalorder %v1524_v21, 113  ;;  %s975_s30 = sshll.u32 %s1385_s8, 3  ;;  %s820_s8 = scalar_lea.sflag [#allocation5], %s1479_s20 }
  0x41   : > { %vm512_vm4 = vcmp.lt.s32.totalorder %v1524_v21, 112  ;;  %v515_v63 = vperm.slane %v1526_v22, 7  ;;  %vm379_vm5 = vcmp.lt.s32.totalorder %v1524_v21, 17  ;;  %vm536_vm6 = vcmp.lt.s32.totalorder %v1524_v21, 111  ;;  %s1249_s28 = scalar_lea.hbm %s1786_s7, 16 }
  0x42   : > { %vm421_vm7 = vcmp.lt.s32.totalorder %v1524_v21, 15  ;;  %vm565_vm8 = vcmask 1043456   ;;  %vm561_vm9 = vcmask 293888  }
  0x44   : > { %v369_v1 = vld.sshfl [vmem:[#allocation1] sm:$0xff pattern:$0x75316420]  ;;  %v370_v2 = vld.sshfl [vmem:[#allocation1 + $0x8] sm:$0xff pattern:$0x75316420] }
  0x45   : > { %388 = vst [vmem:[#allocation1] ss:$2 sm:$0xff] %v1497_v0 }
  0x4c   : > { %v389_v3 = vld.sshfl [vmem:[#allocation1] sm:$0xff pattern:$0x75316420]  ;;  %v390_v4 = vld.sshfl [vmem:[#allocation1 + $0x8] sm:$0xff pattern:$0x75316420] }
  0x4d   : > { %412 = vst [vmem:[#allocation1] ss:$2 sm:$0xff] %v1497_v0  ;;  %393 = vrot.lane.b32.xlu1 %v389_v3, %s1311_s3  ;;  %395 = vrot.lane.b32.xlu2 %v390_v4, %s1311_s3  ;;  %v1582_v4 = vld [vmem:[%s1785_s6] sm:$0xf] }
  0x54   : > { %v413_v5 = vld.sshfl [vmem:[#allocation1] sm:$0xff pattern:$0x75316420]  ;;  %v414_v6 = vld.sshfl [vmem:[#allocation1 + $0x8] sm:$0xff pattern:$0x75316420] }
  0x55   : > { %417 = vrot.lane.b32.xlu0 %v413_v5, %s1312_s9  ;;  %430 = vst [vmem:[#allocation1] ss:$2 sm:$0xff] %v1497_v0  ;;  %v363_v5 = vld [vmem:[#allocation8] sm:$0xff] }
  0x5c   : > { %v432_v7 = vld.sshfl [vmem:[#allocation1 + $0x8] sm:$0xff pattern:$0x75316420]  ;;  %v431_v8 = vld.sshfl [vmem:[#allocation1] sm:$0xff pattern:$0x75316420] }
  0x5d   : > { %437 = vrot.lane.b32.xlu0 %v432_v7, %s1313_s15  ;;  %454 = vst [vmem:[#allocation1] ss:$2 sm:$0xff] %v1497_v0  ;;  %435 = vrot.lane.b32.xlu2 %v431_v8, %s1313_s15  ;;  %v1319_v8 = vmov 0  }
  0x5e   : > { %1075 = vset.pattern.permute.xlu1 %v1319_v8 }
  0x64   : > { %v455_v9 = vld.sshfl [vmem:[#allocation1] sm:$0xff pattern:$0x75316420]  ;;  %v456_v10 = vld.sshfl [vmem:[#allocation1 + $0x8] sm:$0xff pattern:$0x75316420] }
  0x65   : > { %461 = vst [vmem:[#allocation1] ss:$2 sm:$0xff] %v1497_v0 }
  0x66   : > { %459 = vst [vmem:[#allocation2 + $0x48] sm:$0xf] %v455_v9 }
  0x67   : > { %460 = vst [vmem:[#allocation2 + $0x28] sm:$0xf] %v456_v10 }
  0x6c   : > { %v462_v11 = vld.sshfl [vmem:[#allocation1] sm:$0xff pattern:$0x75316420]  ;;  %v463_v12 = vld.sshfl [vmem:[#allocation1 + $0x8] sm:$0xff pattern:$0x75316420] }
  0x6d   : > { %485 = vst [vmem:[#allocation1] ss:$2 sm:$0xff] %v1497_v0  ;;  %466 = vrot.lane.b32.xlu2 %v462_v11, %s1314_s11 }
  0x74   : > { %v486_v13 = vld.sshfl [vmem:[#allocation1] sm:$0xff pattern:$0x75316420]  ;;  %v487_v14 = vld.sshfl [vmem:[#allocation1 + $0x8] sm:$0xff pattern:$0x75316420] }
  0x75   : > { %490 = vrot.lane.b32.xlu0 %v486_v13, %s1315_s16  ;;  %492 = vrot.lane.b32.xlu1 %v487_v14, %s1315_s16  ;;  %503 = vst [vmem:[#allocation1] ss:$2 sm:$0xff] %v1497_v0  ;;  %v382_v13 = vperm.slane %v1526_v22, 0 }
  0x76   : > { %468 = vrot.lane.b32.xlu2 %v463_v12, %s1314_s11 }
  0x7c   : > { %v504_v15 = vld.sshfl [vmem:[#allocation1] sm:$0xff pattern:$0x75316420]  ;;  %v505_v16 = vld.sshfl [vmem:[#allocation1 + $0x8] sm:$0xff pattern:$0x75316420] }
  0x7d   : > { %508 = vrot.lane.b32.xlu0 %v504_v15, %s1316_s13  ;;  %527 = vst [vmem:[#allocation1] ss:$2 sm:$0xff] %v1497_v0  ;;  %v383_v15 = vperm.slane %v1528_v23, 0 }
  0x7e   : > { %373 = vrot.lane.b32.xlu2 %v369_v1, %s1317_s17  ;;  %v516_v1 = vperm.slane %v1528_v23, 7 }
  0x84   : > { %v528_v17 = vld.sshfl [vmem:[#allocation1] sm:$0xff pattern:$0x75316420]  ;;  %v529_v18 = vld.sshfl [vmem:[#allocation1 + $0x8] sm:$0xff pattern:$0x75316420] }
  0x85   : > { %510 = vrot.lane.b32.xlu0 %v505_v16, %s1316_s13  ;;  %532 = vrot.lane.b32.xlu1 %v528_v17, %s1318_s23  ;;  %556 = vst [vmem:[#allocation1] ss:$2 sm:$0xff] %v363_v5  ;;  %v1597_v16 = vld [vmem:[#allocation6 + $0x10] ss:$0 sm:$0xff]  ;;  %v1599_v17 = vld [vmem:[#allocation6 + $0x18] ss:$0 sm:$0xff] }
  0x8d   : > { %375 = vrot.lane.b32.xlu0 %v370_v2, %s1317_s17  ;;  %534 = vrot.lane.b32.xlu1 %v529_v18, %s1318_s23 }
  0x95   : > { %419 = vrot.lane.b32.xlu1 %v414_v6, %s1312_s9 }
  0x9d   : > { %616 = vperm.xlu1 %1075, %v1582_v4  }
  0xa7   : > { %v396_v19 = vpop.permute.xlu2 %395 }
  0xb7   : > { %v436_v26 = vpop.permute.xlu2 %435 }
  0xbf   : > { %v394_v27 = vpop.permute.xlu1 %393 }
  0xc0   : > { %v398_v28 = vsel %vm397_vm0, %v394_v27, %v396_v19  ;;  %v399_v29 = vsel %vm397_vm0, %v396_v19, %v394_v27 }
  0xc1   : > { %v402_v30 = vmul.f32 %v400_v24, %v399_v29  ;;  %v403_v31 = vmul.f32 %v401_v25, %v398_v28 }
  0xc3   : > { %v406_v32 = vrot.slane %v402_v30, 4  ;;  %v407_v33 = vrot.slane %v403_v31, 4 }
  0xc5   : > { %410 = vst [vmem:[#allocation2 + $0x30] sm:$0xf0] %v406_v32 }
  0xc6   : > { %411 = vst [vmem:[#allocation2] sm:$0xf0] %v407_v33  ;;  %v424_v33 = vperm.slane %v1526_v22, 2 }
  0xc7   : > { %v1541_v34 = vpop.permute.xlu0 %417  ;;  %v467_v35 = vpop.permute.xlu2 %466 }
  0xcf   : > { %v438_v38 = vpop.permute.xlu0 %437 }
  0xd0   : > { %v440_v41 = vsel %vm439_vm1, %v436_v26, %v438_v38  ;;  %v441_v42 = vsel %vm439_vm1, %v438_v38, %v436_v26  ;;  %v469_v43 = vpop.permute.xlu2 %468 }
  0xd1   : > { %v444_v44 = vmul.f32 %v442_v36, %v441_v42  ;;  %v445_v45 = vmul.f32 %v443_v37, %v440_v41  ;;  %v471_v46 = vsel %vm470_vm2, %v467_v35, %v469_v43  ;;  %v472_v47 = vsel %vm470_vm2, %v469_v43, %v467_v35 }
  0xd2   : > { %v475_v48 = vmul.f32 %v473_v39, %v471_v46  ;;  %v476_v49 = vmul.f32 %v474_v40, %v472_v47  ;;  %v425_v35 = vperm.slane %v1528_v23, 2 }
  0xd3   : > { %v448_v50 = vrot.slane %v444_v44, 4  ;;  %v449_v51 = vrot.slane %v445_v45, 4 }
  0xd4   : > { %v479_v52 = vrot.slane %v475_v48, 4  ;;  %v480_v53 = vrot.slane %v476_v49, 4 }
  0xd5   : > { %452 = vst [vmem:[#allocation2 + $0x18] sm:$0xf0] %v448_v50 }
  0xd6   : > { %453 = vst [vmem:[#allocation2 + $0x10] sm:$0xf0] %v449_v51 }
  0xd7   : > { %483 = vst [vmem:[#allocation2 + $0x48] sm:$0xf0] %v479_v52  ;;  %v361_v52 = vld [vmem:[%s1781_s2] sm:$0xf] }
  0xd8   : > { %484 = vst [vmem:[#allocation2 + $0x28] sm:$0xf0] %v480_v53  ;;  %v374_v14 = vpop.permute.xlu2 %373 }
  0xdf   : > { %v550_v49 = vld [vmem:[#allocation2 + $0x28] sm:$0xff] }
  0xe7   : > { %v491_v56 = vpop.permute.xlu0 %490  ;;  %v493_v57 = vpop.permute.xlu1 %492 }
  0xe8   : > { %v495_v58 = vsel %vm494_vm3, %v491_v56, %v493_v57  ;;  %v496_v59 = vsel %vm494_vm3, %v493_v57, %v491_v56  ;;  %v557_v57 = vld.sshfl [vmem:[#allocation1] sm:$0xff pattern:$0x75316420] }
  0xe9   : > { %v499_v60 = vmul.f32 %v497_v54, %v495_v58  ;;  %v500_v61 = vmul.f32 %v498_v55, %v496_v59  ;;  %v558_v58 = vld.sshfl [vmem:[#allocation1 + $0x8] sm:$0xff pattern:$0x75316420] }
  0xea   : > { %623 = vst [vmem:[#allocation1] ss:$2 sm:$0xff] %v1497_v0 }
  0xeb   : > { %501 = vst [vmem:[#allocation2 + $0x8] sm:$0xf] %v499_v60 }
  0xec   : > { %502 = vst [vmem:[#allocation2 + $0x20] sm:$0xf] %v500_v61 }
  0xef   : > { %v509_v62 = vpop.permute.xlu0 %508 }
  0xf1   : > { %v624_v5 = vld.sshfl [vmem:[#allocation1] sm:$0xff pattern:$0x75316420] }
  0xf7   : > { %v511_v2 = vpop.permute.xlu0 %510  ;;  %v533_v3 = vpop.permute.xlu1 %532 }
  0xf8   : > { %v513_v6 = vsel %vm512_vm4, %v509_v62, %v511_v2  ;;  %v514_v7 = vsel %vm512_vm4, %v511_v2, %v509_v62 }
  0xf9   : > { %v517_v9 = vmul.f32 %v515_v63, %v513_v6  ;;  %v518_v10 = vmul.f32 %v516_v1, %v514_v7  ;;  %v625_v7 = vld.sshfl [vmem:[#allocation1 + $0x8] sm:$0xff pattern:$0x75316420] }
  0xfb   : > { %v521_v11 = vrot.slane %v517_v9, 4  ;;  %v522_v12 = vrot.slane %v518_v10, 4 }
  0xfd   : > { %525 = vst [vmem:[#allocation2 + $0x8] sm:$0xf0] %v521_v11 }
  0xfe   : > { %526 = vst [vmem:[#allocation2 + $0x20] sm:$0xf0] %v522_v12 }
  0xff   : > { %v376_v18 = vpop.permute.xlu0 %375  ;;  %v535_v19 = vpop.permute.xlu1 %534 }
 0x100   : > { %v380_v20 = vsel %vm379_vm5, %v374_v14, %v376_v18  ;;  %v381_v26 = vsel %vm379_vm5, %v376_v18, %v374_v14  ;;  %v537_v27 = vsel %vm536_vm6, %v533_v3, %v535_v19  ;;  %v538_v28 = vsel %vm536_vm6, %v535_v19, %v533_v3 }
 0x101   : > { %v384_v29 = vmul.f32 %v382_v13, %v381_v26  ;;  %v385_v30 = vmul.f32 %v383_v15, %v380_v20  ;;  %v541_v31 = vmul.f32 %v1597_v16, %v537_v27  ;;  %v542_v32 = vmul.f32 %v1599_v17, %v538_v28 }
 0x103   : > { %386 = vst [vmem:[#allocation2 + $0x30] sm:$0xf] %v384_v29 }
 0x104   : > { %387 = vst [vmem:[#allocation2] sm:$0xf] %v385_v30  ;;  %v551_v47 = vld [vmem:[#allocation2 + $0x8] sm:$0xff] }
 0x105   : > { %543 = vst [vmem:[#allocation2 + $0x40] sm:$0xf] %v541_v31  ;;  %v552_v48 = vld [vmem:[#allocation2 + $0x20] sm:$0xff] }
 0x106   : > { %544 = vst [vmem:[#allocation2 + $0x38] sm:$0xf] %v542_v32 }
 0x107   : > { %v420_v38 = vpop.permute.xlu1 %419 }
 0x108   : > { %v422_v41 = vsel %vm421_vm7, %v1541_v34, %v420_v38  ;;  %v423_v42 = vsel %vm421_vm7, %v420_v38, %v1541_v34  ;;  %v549_v34 = vld [vmem:[#allocation2 + $0x48] sm:$0xff] }
 0x109   : > { %v426_v43 = vmul.f32 %v424_v33, %v423_v42  ;;  %v427_v44 = vmul.f32 %v425_v35, %v422_v41 }
 0x10a   : > { %v545_v53 = vld [vmem:[#allocation2 + $0x30] sm:$0xff] }
 0x10b   : > { %428 = vst [vmem:[#allocation2 + $0x18] sm:$0xf] %v426_v43  ;;  %v546_v56 = vld [vmem:[#allocation2] sm:$0xff] }
 0x10c   : > { %429 = vst [vmem:[#allocation2 + $0x10] sm:$0xf] %v427_v44  ;;  %v553_v45 = vld [vmem:[#allocation2 + $0x40] sm:$0xf] }
 0x10d   : > { %961 = vmatpush.msk.msra.mxu0 %vm565_vm8, %v553_v45  ;;  %v554_v46 = vld [vmem:[#allocation2 + $0x38] sm:$0xf] }
 0x10e   : > { %963 = vmatpush.msk.msra.mxu1 %vm565_vm8, %v554_v46 }
 0x10f   : > { %584 = vmatpush.msra.mxu0 %v551_v47  ;;  %v617_v60 = vpop.permute.xlu1 %616 }
 0x110   : > { %604 = vmatpush.msra.mxu1 %v552_v48 }
 0x111   : > { %585 = vmatpush.msra.mxu0 %v549_v34 }
 0x112   : > { %605 = vmatpush.msra.mxu1 %v550_v49  ;;  %v547_v50 = vld [vmem:[#allocation2 + $0x18] sm:$0xff] }
 0x113   : > { %586 = vmatpush.msra.mxu0 %v547_v50  ;;  %v548_v51 = vld [vmem:[#allocation2 + $0x10] sm:$0xff] }
 0x114   : > { %606 = vmatpush.msra.mxu1 %v548_v51 }
 0x115   : > { %587 = vmatpush.msra.mxu0 %v545_v53 }
 0x116   : > { %607 = vmatpush.msra.mxu1 %v546_v56  ;;  %962 = vmatmul.msk.f32.vlgmr.msra.gmra.mxu0 %vm561_vm9, %v361_v52 }
 0x117   : > { %964 = vmatmul.msk.f32.vlgmr.msra.gmra.mxu1 %vm561_vm9, %v361_v52 }
 0x193   : > { %v589_v59 = vpop.f32.mrf.mxu0 }
 0x194   : > { %v590_v61 = vadd.f32 %v589_v59, %v557_v57  ;;  %v609_v62 = vpop.f32.mrf.mxu1  ;;  %v1320_v57 = vmov 1  }
 0x195   : > { %v610_v2 = vadd.f32 %v609_v62, %v558_v58  ;;  %1076 = vset.pattern.permute.xlu0 %v1320_v57 }
 0x196   : > { %vm612_vm10 = vcmp.gt.f32.partialorder %v590_v61, 0.0  ;;  %v619_v3 = vmul.f32 %v617_v60, %v590_v61 }
 0x197   : > { %vm613_vm11 = vcmp.gt.f32.partialorder %v610_v2, 0.0  ;;  %v620_v6 = vmul.f32 %v617_v60, %v610_v2 }
 0x198   : > { %v621_v8 = vsel %vm612_vm10, %v590_v61, %v619_v3 }
 0x199   : > { %v622_v9 = vsel %vm613_vm11, %v610_v2, %v620_v6  ;;  %v1636_v10 = vadd.f32 %v624_v5, %v621_v8 }
 0x19a   : > { %v1638_v11 = vadd.f32 %v625_v7, %v622_v9 }
 0x19b   : > { %682 = vst [vmem:[#allocation2 + $0x48] sm:$0xf] %v1636_v10  ;;  %726 = vrot.lane.b32.xlu1 %v1636_v10, %s1318_s23  ;;  %710 = vrot.lane.b32.xlu2 %v1636_v10, %s1316_s13 }
 0x19c   : > { %683 = vst [vmem:[#allocation2 + $0x28] sm:$0xf] %v1638_v11  ;;  %712 = vrot.lane.b32.xlu0 %v1638_v11, %s1316_s13 }
 0x1a3   : > { %686 = vrot.lane.b32.xlu1 %v1638_v11, %s1314_s11  ;;  %728 = vrot.lane.b32.xlu2 %v1638_v11, %s1318_s23 }
 0x1a4   : > { %684 = vrot.lane.b32.xlu0 %v1636_v10, %s1314_s11 }
 0x1ab   : > { %666 = vrot.lane.b32.xlu1 %v1636_v10, %s1313_s15  ;;  %700 = vrot.lane.b32.xlu2 %v1636_v10, %s1315_s16 }
 0x1ac   : > { %702 = vrot.lane.b32.xlu0 %v1638_v11, %s1315_s16 }
 0x1b3   : > { %642 = vrot.lane.b32.xlu1 %v1638_v11, %s1311_s3  ;;  %668 = vrot.lane.b32.xlu2 %v1638_v11, %s1313_s15  ;;  %s356_s15 = scalar_lea.vmem [#allocation12], %s955_s12 }
 0x1b4   : > { %640 = vrot.lane.b32.xlu0 %v1636_v10, %s1311_s3  ;;  %s833_s11 = sshll.u32 %s356_s15, 4  ;;  %s834_s11 = int_to_ptr.vmem [resolvable:$true] %s833_s11 }
 0x1bb   : > { %630 = vrot.lane.b32.xlu1 %v1636_v10, %s1317_s17  ;;  %656 = vrot.lane.b32.xlu2 %v1636_v10, %s1312_s9 }
 0x1bc   : > { %658 = vrot.lane.b32.xlu0 %v1638_v11, %s1312_s9  ;;  %s831_s9 = scalar_lea.hbm %s1786_s7, %s975_s30 }
 0x1bd   : > { %s835_s16 = sshll.u32 %s831_s9, 4  ;;  %s836_s16 = int_to_ptr.hbm [resolvable:$true] %s835_s16 }
 0x1be   : > { %s1243_s13 = sshra.s32 %s836_s16, 4  ;;  %s1244_s13 = int_to_ptr.hbm [resolvable:$true] %s1243_s13 }
 0x1bf   : > { %p1250_p12 = scmp.lt.s32.totalorder %s1244_s13, %s1786_s7 }
 0x1c3   : > { %632 = vrot.lane.b32.xlu2 %v1638_v11, %s1317_s17  ;;  %s1245_s17 = scalar_lea.hbm %s1244_s13, 8 }
 0x1c4   : > { %804 = vperm.xlu0 %1076, %v1582_v4   ;;  %p1246_p1 = scmp.ne.s32.totalorder %s1244_s13, %s1245_s17  ;;  %p1251_p7 = scmp.lt.s32.totalorder %s1249_s28, %s1245_s17 }
 0x1c6   : > { %p1247_p3 = pnand %p1246_p1, %p1448_p4  ;;  %p1252_p8 = por %p1251_p7, %p1250_p12 }
 0x1c8   : > { %p1248_p5 = pneg %p1247_p3 }
 0x1ca   : > { %p1253_p9 = pnand %p1252_p8, %p1248_p5 }
 0x1f5   : > { %v711_v0 = vpop.permute.xlu2 %710 }
 0x1fd   : > { %v729_v12 = vpop.permute.xlu2 %728 }
 0x205   : > { %v701_v26 = vpop.permute.xlu2 %700 }
 0x20d   : > { %v727_v14 = vpop.permute.xlu1 %726  ;;  %v669_v45 = vpop.permute.xlu2 %668 }
 0x20e   : > { %v713_v18 = vpop.permute.xlu0 %712  ;;  %v730_v19 = vsel %vm536_vm6, %v727_v14, %v729_v12  ;;  %v731_v20 = vsel %vm536_vm6, %v729_v12, %v727_v14 }
 0x20f   : > { %v714_v27 = vsel %vm512_vm4, %v711_v0, %v713_v18  ;;  %v715_v28 = vsel %vm512_vm4, %v713_v18, %v711_v0  ;;  %v732_v29 = vmul.f32 %v1597_v16, %v730_v19  ;;  %v733_v30 = vmul.f32 %v1599_v17, %v731_v20 }
 0x210   : > { %v716_v31 = vmul.f32 %v714_v27, %v515_v63  ;;  %v717_v32 = vmul.f32 %v715_v28, %v516_v1 }
 0x211   : > { %734 = vst [vmem:[#allocation2 + $0x40] sm:$0xf] %v732_v29 }
 0x212   : > { %v720_v38 = vrot.slane %v716_v31, 4  ;;  %v721_v41 = vrot.slane %v717_v32, 4  ;;  %735 = vst [vmem:[#allocation2 + $0x38] sm:$0xf] %v733_v30  ;;  %v362_v30 = vld [vmem:[#allocation9] sm:$0xf] }
 0x214   : > { %724 = vst [vmem:[#allocation2 + $0x8] sm:$0xf0] %v720_v38 }
 0x215   : > { %725 = vst [vmem:[#allocation2 + $0x20] sm:$0xf0] %v721_v41  ;;  %v687_v42 = vpop.permute.xlu1 %686  ;;  %v657_v62 = vpop.permute.xlu2 %656 }
 0x216   : > { %v685_v43 = vpop.permute.xlu0 %684 }
 0x217   : > { %v688_v44 = vsel %vm470_vm2, %v685_v43, %v687_v42  ;;  %v689_v16 = vsel %vm470_vm2, %v687_v42, %v685_v43 }
 0x218   : > { %v690_v63 = vmul.f32 %v688_v44, %v473_v39  ;;  %v691_v1 = vmul.f32 %v689_v16, %v474_v40  ;;  %v744_v17 = vld [vmem:[#allocation2 + $0x40] sm:$0xf]  ;;  %v364_v40 = vld [vmem:[#allocation11] sm:$0xff] }
 0x219   : > { %965 = vmatpush.msk.msra.mxu2 %vm565_vm8, %v744_v17  ;;  %v745_v46 = vld [vmem:[#allocation2 + $0x38] sm:$0xf]  ;;  %747 = vst [vmem:[#allocation1] ss:$2 sm:$0xff] %v364_v40 }
 0x21a   : > { %v694_v47 = vrot.slane %v690_v63, 4  ;;  %v695_v48 = vrot.slane %v691_v1, 4  ;;  %967 = vmatpush.msk.msra.mxu3 %vm565_vm8, %v745_v46 }
 0x21c   : > { %698 = vst [vmem:[#allocation2 + $0x48] sm:$0xf0] %v694_v47 }
 0x21d   : > { %699 = vst [vmem:[#allocation2 + $0x28] sm:$0xf0] %v695_v48  ;;  %v667_v34 = vpop.permute.xlu1 %666  ;;  %v633_v0 = vpop.permute.xlu2 %632 }
 0x21e   : > { %v703_v49 = vpop.permute.xlu0 %702  ;;  %v670_v50 = vsel %vm439_vm1, %v667_v34, %v669_v45  ;;  %v671_v39 = vsel %vm439_vm1, %v669_v45, %v667_v34 }
 0x21f   : > { %v704_v51 = vsel %vm494_vm3, %v701_v26, %v703_v49  ;;  %v705_v52 = vsel %vm494_vm3, %v703_v49, %v701_v26  ;;  %v672_v53 = vmul.f32 %v671_v39, %v442_v36  ;;  %v673_v56 = vmul.f32 %v670_v50, %v443_v37 }
 0x220   : > { %v706_v58 = vmul.f32 %v704_v51, %v497_v54  ;;  %v707_v59 = vmul.f32 %v705_v52, %v498_v55  ;;  %v748_v23 = vld.sshfl [vmem:[#allocation1] sm:$0xff pattern:$0x75316420] }
 0x221   : > { %v676_v60 = vrot.slane %v672_v53, 4  ;;  %v677_v61 = vrot.slane %v673_v56, 4 }
 0x222   : > { %708 = vst [vmem:[#allocation2 + $0x8] sm:$0xf] %v706_v58 }
 0x223   : > { %709 = vst [vmem:[#allocation2 + $0x20] sm:$0xf] %v707_v59  ;;  %v740_v8 = vld [vmem:[#allocation2 + $0x48] sm:$0xff] }
 0x224   : > { %680 = vst [vmem:[#allocation2 + $0x18] sm:$0xf0] %v676_v60  ;;  %v741_v9 = vld [vmem:[#allocation2 + $0x28] sm:$0xff] }
 0x225   : > { %681 = vst [vmem:[#allocation2 + $0x10] sm:$0xf0] %v677_v61  ;;  %v643_v36 = vpop.permute.xlu1 %642 }
 0x226   : > { %v641_v37 = vpop.permute.xlu0 %640 }
 0x227   : > { %v644_v2 = vsel %vm397_vm0, %v641_v37, %v643_v36  ;;  %v645_v54 = vsel %vm397_vm0, %v643_v36, %v641_v37 }
 0x228   : > { %v646_v55 = vmul.f32 %v645_v54, %v400_v24  ;;  %v647_v4 = vmul.f32 %v644_v2, %v401_v25 }
 0x229   : > { %v742_v3 = vld [vmem:[#allocation2 + $0x8] sm:$0xff] }
 0x22a   : > { %v650_v5 = vrot.slane %v646_v55, 4  ;;  %v651_v6 = vrot.slane %v647_v4, 4  ;;  %773 = vmatpush.msra.mxu2 %v742_v3  ;;  %v743_v7 = vld [vmem:[#allocation2 + $0x20] sm:$0xff] }
 0x22b   : > { %793 = vmatpush.msra.mxu3 %v743_v7 }
 0x22c   : > { %654 = vst [vmem:[#allocation2 + $0x30] sm:$0xf0] %v650_v5  ;;  %774 = vmatpush.msra.mxu2 %v740_v8 }
 0x22d   : > { %655 = vst [vmem:[#allocation2] sm:$0xf0] %v651_v6  ;;  %794 = vmatpush.msra.mxu3 %v741_v9  ;;  %v631_v12 = vpop.permute.xlu1 %630 }
 0x22e   : > { %v659_v14 = vpop.permute.xlu0 %658  ;;  %v634_v24 = vsel %vm379_vm5, %v631_v12, %v633_v0  ;;  %v635_v25 = vsel %vm379_vm5, %v633_v0, %v631_v12 }
 0x22f   : > { %v660_v18 = vsel %vm421_vm7, %v657_v62, %v659_v14  ;;  %v661_v19 = vsel %vm421_vm7, %v659_v14, %v657_v62  ;;  %v636_v20 = vmul.f32 %v635_v25, %v382_v13  ;;  %v637_v28 = vmul.f32 %v634_v24, %v383_v15  ;;  %v749_v15 = vld.sshfl [vmem:[#allocation1 + $0x8] sm:$0xff pattern:$0x75316420] }
 0x230   : > { %v662_v26 = vmul.f32 %v661_v19, %v424_v33  ;;  %v663_v27 = vmul.f32 %v660_v18, %v425_v35 }
 0x231   : > { %638 = vst [vmem:[#allocation2 + $0x30] sm:$0xf] %v636_v20 }
 0x232   : > { %664 = vst [vmem:[#allocation2 + $0x18] sm:$0xf] %v662_v26 }
 0x233   : > { %665 = vst [vmem:[#allocation2 + $0x10] sm:$0xf] %v663_v27 }
 0x234   : > { %639 = vst [vmem:[#allocation2] sm:$0xf] %v637_v28 }
 0x236   : > { %v805_v35 = vpop.permute.xlu0 %804 }
 0x238   : > { %v736_v13 = vld [vmem:[#allocation2 + $0x30] sm:$0xff] }
 0x239   : > { %v738_v29 = vld [vmem:[#allocation2 + $0x18] sm:$0xff] }
 0x23a   : > { %775 = vmatpush.msra.mxu2 %v738_v29  ;;  %v739_v21 = vld [vmem:[#allocation2 + $0x10] sm:$0xff] }
 0x23b   : > { %795 = vmatpush.msra.mxu3 %v739_v21  ;;  %v737_v22 = vld [vmem:[#allocation2] sm:$0xff] }
 0x23c   : > { %776 = vmatpush.msra.mxu2 %v736_v13 }
 0x23d   : > { %796 = vmatpush.msra.mxu3 %v737_v22  ;;  %966 = vmatmul.msk.f32.vlgmr.msra.gmra.mxu2 %vm561_vm9, %v362_v30 }
 0x23e   : > { %968 = vmatmul.msk.f32.vlgmr.msra.gmra.mxu3 %vm561_vm9, %v362_v30 }
 0x2c0   : > { %v778_v33 = vpop.f32.mrf.mxu2 }
 0x2c1   : > { %v779_v31 = vadd.f32 %v778_v33, %v748_v23  ;;  %v798_v32 = vpop.f32.mrf.mxu3 }
 0x2c2   : > { %v799_v38 = vadd.f32 %v798_v32, %v749_v15 }
 0x2c3   : > { %vm801_vm12 = vcmp.gt.f32.partialorder %v779_v31, 0.0  ;;  %v807_v41 = vmul.f32 %v805_v35, %v779_v31 }
 0x2c4   : > { %vm802_vm13 = vcmp.gt.f32.partialorder %v799_v38, 0.0  ;;  %v808_v42 = vmul.f32 %v805_v35, %v799_v38 }
 0x2c5   : > { %v809_v43 = vsel %vm801_vm12, %v779_v31, %v807_v41 }
 0x2c6   : > { %v810_v44 = vsel %vm802_vm13, %v799_v38, %v808_v42  ;;  %v811_v63 = vadd.f32 %v809_v43, %v1636_v10 }
 0x2c7   : > { %v812_v16 = vadd.f32 %v810_v44, %v1638_v11 }
 0x2c9   : > { %v815_v1 = vrot.slane %v812_v16, 4 }
 0x2cb   : > { %v816_v17 = vsel %vm565_vm8, %v811_v63, %v815_v1 }
 0x2cc   : > { %818 = vst [vmem:[%s356_s15] sm:$0xff] %v816_v17 }
 0x2cd   : > { %1256 = shalt.err (!%p1253_p9)
}
 0x2ce   : > { %994 = dma.vmem_to_hbm [thread:$0]  (%p1448_p4), %s834_s11, 128, %s836_s16, %s820_s8  }
 0x2cf PF: > { %s847_s20 = sand.u32 1, %s1291_s24   ;;  %p1798_p10 = scmp.ge.s32.totalorder %s1303_s27, 2 }
 0x2d0   : > { %s848_s19 = scalar_lea.sflag [#allocation5], %s847_s20 }
 0x2d1   : > { %p1014_p13 = pnand %p1798_p10, %p1452_p6 }
 0x2d3   : > { %p1015_p11 = pneg %p1014_p13 }
 0x2d5   : > { %1286 = dma.done.wait (%p1015_p11), %s848_s19, 128  }
 0x2d6   : > { %1288 = vsyncadd (%p1015_p11), %s848_s19, 4294967168  ;;  %p22_p0 = scmp.ge.s32.totalorder %s1422_s14, 4   ;;  %s1799_s24 = smov %s1295_s25 }
 0x2d7   : > { %s1800_s25 = smov %s1299_s26  ;;  %s1801_s26 = smov %s1433_s18 }
 0x2d8   : > { %s1802_s27 = smov %s1422_s14  ;;  %24 = sbr.rel (!%p22_p0) target bundleno = 10 (0xa), region = 109 }
 0x2dd   :  { %854 = vsyncpa [#allocation4], 1 }
 0x2de   :  { %856 = vsyncpa [#allocation4 + $0x1], 1 }
 0x2df   :  { %857 = vsyncpa [#allocation7], 1 }
 0x2e0   :  { %858 = vsyncpa [#allocation10], 1 }
 0x2e1   :  { %859 = vsyncpa [#allocation5], 1 }
 0x2e2   :  { %861 = vsyncpa [#allocation5 + $0x1], 1 }

</bundles_post_ra>
